<compile_context>
chip_gen: v7x
topology: tpu7x:2x2x1
jax: 0.10.0
libtpu: 0.0.40
codegen_flags: <defaults>
</compile_context>

<pallas_src>
import jax
import jax.numpy as jnp
import numpy as np
from jax.experimental import pallas as pl
from jax.experimental.pallas import tpu as pltpu


# -----------------------------------------------------------------------------
# Pallas kernel: single HBM -> HBM DMA copy (no VMEM staging, no grid).
# -----------------------------------------------------------------------------
def _hbm_copy_kernel(x_ref, o_ref, sem):
    # Both refs live in HBM (memory_space=pl.ANY); issue one DMA descriptor
    # for the whole array and wait for completion.
    cp = pltpu.make_async_copy(x_ref, o_ref, sem)
    cp.start()
    cp.wait()


def _materialized_copy(x):
    """Materialize a fresh copy of `x` into a new HBM buffer via one DMA.

    A pure copy has no compute to pipeline, so we skip the
    HBM->VMEM->vreg->VMEM->HBM round trip entirely: one HBM->HBM DMA,
    bounded only by HBM/DMA bandwidth on v5e/v6e/v7x, with zero VMEM
    pressure and no tiling / alignment constraints.
    """
    nbytes = int(x.size) * jnp.dtype(x.dtype).itemsize
    return pl.pallas_call(
        _hbm_copy_kernel,
        out_shape=jax.ShapeDtypeStruct(x.shape, x.dtype),
        in_specs=[pl.BlockSpec(memory_space=pl.ANY)],
        out_specs=pl.BlockSpec(memory_space=pl.ANY),
        scratch_shapes=[pltpu.SemaphoreType.DMA],
        cost_estimate=pl.CostEstimate(
            flops=0, transcendentals=0, bytes_accessed=2 * nbytes
        ),
    )(x)


# -----------------------------------------------------------------------------
# Module wrapper mirroring BaseSimilarityNet.
# -----------------------------------------------------------------------------
class BaseSimilarityNet:
    """JAX/Pallas port of the PyTorch BaseSimilarityNet base class."""

    def __init__(self, words_size, max_sentences_size):
        self.words_size = words_size
        self.max_sentences_size = max_sentences_size
        # No parameters: the PyTorch __init__ registers no layers/weights.

    def forward(self, *_input):
        # PyTorch forward body is `pass`: no compute, returns None.
        # No device work / host sync happens here.
        return None

    def identity(self, x):
        # Perf review: an aliased identity kernel is 100% overhead (pure HBM
        # read+write of the same bytes, zero compute).  Short-circuit and
        # return the input unchanged — no kernel launch, no buffer donation.
        return x

    def copy(self, x):
        # Genuinely materialized copy into a NEW HBM buffer: single
        # HBM->HBM DMA through the Pallas kernel above.
        return _materialized_copy(x)

    def __call__(self, *_input):
        return self.forward(*_input)

    # TODO(synk): save() uses torch.save (host-side serialization); no Pallas
    #             equivalent is implemented.


if __name__ == "__main__":
    # Small shapes implied by the module's constructor:
    #   words_size (embedding) = 32, max_sentences_size (seq) = 8, batch = 2
    batch = 2
    max_sentences_size = 8
    words_size = 32

    key = jax.random.PRNGKey(0)
    x = jax.random.normal(
        key, (batch, max_sentences_size, words_size), dtype=jnp.float32
    )
    x_host = np.asarray(x)

    net = BaseSimilarityNet(words_size, max_sentences_size)

    # Module forward matches PyTorch semantics (returns None, no device work).
    assert net(x) is None

    # Identity path: short-circuited, no kernel launch, values unchanged and
    # the caller's buffer is NOT donated/invalidated.
    y_id = net.identity(x)
    np.testing.assert_array_equal(np.asarray(y_id), x_host)

    # Exercise the Pallas HBM->HBM DMA copy kernel once and verify.
    y = net.copy(x)
    y = jax.block_until_ready(y)
    assert y.shape == x_host.shape and y.dtype == jnp.float32
    np.testing.assert_array_equal(np.asarray(y), x_host)
    # Original input is untouched (fresh output buffer, no aliasing).
    np.testing.assert_array_equal(np.asarray(x), x_host)

    print("KERNEL_OK")
</pallas_src>

<mosaic_0001>
module attributes {stable_mosaic.version = 11 : i64} {
  func.func @_hbm_copy_kernel(%arg0: memref<2x8x32xf32, #tpu.memory_space<any>>, %arg1: memref<2x8x32xf32, #tpu.memory_space<any>>, %arg2: memref<!tpu.dma_semaphore, #tpu.memory_space<semaphore_mem>>) attributes {dimension_semantics = [], scalar_prefetch = 0 : i64, scratch_operands = 1 : i64, tpu.core_type = #tpu.core_type<tc>} {
    tpu.enqueue_dma source(%arg0 : memref<2x8x32xf32, #tpu.memory_space<any>>) target(%arg1 : memref<2x8x32xf32, #tpu.memory_space<any>>) target_semaphore(%arg2 : memref<!tpu.dma_semaphore, #tpu.memory_space<semaphore_mem>>)
    tpu.wait_dma2 semaphore(%arg2 : memref<!tpu.dma_semaphore, #tpu.memory_space<semaphore_mem>>) src(%arg0 : memref<2x8x32xf32, #tpu.memory_space<any>>) dst(%arg1 : memref<2x8x32xf32, #tpu.memory_space<any>>)
    return
  }
}

</mosaic_0001>

<bundles_post_ra>
// kernel: tpu_custom_call.1
= control target key start
LH: loop header
LB: loop body
LE: loop exit
PB: predicated region body
PF: predicated region fallthrough
CT: control target
= control target key end

     0   :  { %s35_s6 = smov [#allocation2]   ;;  %s36_s7 = smov [#allocation3]   ;;  %s54_s0 = inlined_call_operand.hbm [shape: f32[2,8,32], index: 0, kind: input, shape index: {}]   ;;  %s55_s1 = inlined_call_operand.hbm [shape: f32[2,8,32], index: 1, kind: output, shape index: {}]  }
   0x1   :  { %s37_s8 = smov 0  }
   0x2   :  { %18 = dma.general %s54_s0, 256, %s55_s1, %s35_s6, %s36_s7, [#allocation4], %s37_s8, 0  }
   0x3   :  { %33 = dma.done.wait [#allocation2], 256 }
   0x4   :  { %34 = vsyncadd [#allocation2], 4294967040 }
   0x5   :  { %23 = vsyncmov [#allocation2] }
   0x8   :  { %s24_s13 = vpop.sfrf %23 }
   0x9   :  { %p29_p0 = scmp.ne.s32.totalorder %s24_s13, 0 }
   0xb   :  { %28 = shalt.err (%p29_p0)  }

</bundles_post_ra>
